<compile_context>
chip_gen: v7x
topology: tpu7x:2x2x1
jax: 0.10.0
libtpu: 0.0.40
codegen_flags: <defaults>
</compile_context>

<pallas_src>
import functools

import jax
import jax.numpy as jnp
from jax.experimental import pallas as pl
from jax.experimental.pallas import tpu as pltpu

INPUT_SIZE = 28 * 28   # 784
HIDDEN_DIM = 20
N_CLASSES = 10
H_PAD = 128            # lane-dense hidden width  (cols >= 20 are zero)
N_PAD = 128            # lane-dense output width  (cols >= 10 are zero)
_MAX_TB = 4096         # keeps double-buffered f32 x tiles (~30 MiB) inside the VMEM budget
_VMEM_LIMIT = 48 * 1024 * 1024   # <= 48 MiB: headroom under v7x's 64 MiB physical VMEM


def _round_up(n, m):
    return (n + m - 1) // m * m


def mnistnet_kernel(x_ref, w1_ref, b1_ref, w2_ref, b2_ref, o_ref):
    # x_ref:  (TB, 784)   f32 (or bf16) -- cast to bf16 here, in VMEM
    # w1_ref: (784, 128)  bf16   (cols >= 20 are zero)
    # b1_ref: (1, 128)    f32    (cols >= 20 are zero)
    # w2_ref: (128, 128)  bf16   (rows >= 20 and cols >= 10 are zero)
    # b2_ref: (1, 128)    f32    (cols >= 10 are zero)
    # o_ref:  (TB, 128)   f32 / bf16 (cols >= 10 are zeroed)
    x = x_ref[...].astype(jnp.bfloat16)

    # hidden layer: Linear (MXU, bf16 operands / f32 accumulation) + Sigmoid (exp + recip on EUP)
    h = jnp.dot(x, w1_ref[...], preferred_element_type=jnp.float32) + b1_ref[...]
    h = pl.reciprocal(1.0 + jnp.exp(-h), approx=True)

    # final layer: padded hidden lanes are sigmoid(0)=0.5 but hit zero rows of w2 -> no effect.
    logits = (
        jnp.dot(h.astype(jnp.bfloat16), w2_ref[...], preferred_element_type=jnp.float32)
        + b2_ref[...]
    )

    # log_softmax over the first N_CLASSES lanes only; padded lanes are stored as 0.
    col = jax.lax.broadcasted_iota(jnp.int32, logits.shape, 1)
    valid = col < N_CLASSES
    masked = jnp.where(valid, logits, jnp.float32(-1e30))
    m = jnp.max(masked, axis=-1, keepdims=True)
    exps = jnp.where(valid, jnp.exp(logits - m), 0.0)
    lse = jnp.log(jnp.sum(exps, axis=-1, keepdims=True))
    o_ref[...] = jnp.where(valid, logits - m - lse, 0.0).astype(o_ref.dtype)


def prepare_params(w1, b1, w2, b2):
    """Zero-pad params to lane-dense 128 widths ONCE (hoisted out of the per-call path)."""
    w1p = jnp.zeros((INPUT_SIZE, H_PAD), jnp.bfloat16).at[:, :HIDDEN_DIM].set(
        w1.astype(jnp.bfloat16))
    b1p = jnp.zeros((1, H_PAD), jnp.float32).at[:, :HIDDEN_DIM].set(
        b1.reshape(1, HIDDEN_DIM).astype(jnp.float32))
    w2p = jnp.zeros((H_PAD, N_PAD), jnp.bfloat16).at[:HIDDEN_DIM, :N_CLASSES].set(
        w2.astype(jnp.bfloat16))
    b2p = jnp.zeros((1, N_PAD), jnp.float32).at[:, :N_CLASSES].set(
        b2.reshape(1, N_CLASSES).astype(jnp.float32))
    return w1p, b1p, w2p, b2p


def _choose_tb(batch, tb):
    # >= 2 grid steps whenever the batch allows (v7x megacore split), TB a multiple of 16
    # sublanes, capped so double-buffered f32 x tiles stay inside the VMEM budget.
    half = _round_up(max(1, -(-batch // 2)), 16)
    return max(16, min(_round_up(min(int(tb), _MAX_TB), 16), half))


def mnistnet_forward(x, w1p, b1p, w2p, b2p, *, tb=1024,
                     out_dtype=jnp.float32, slice_output=True):
    # x: (B, 1, 28, 28) / (B, 28, 28) / (B, 784) -> flatten like x.view(B, -1).
    # Pass x in its native float dtype; the kernel casts to bf16 in VMEM (no wrapper astype).
    B = x.shape[0]
    x2d = x.reshape(B, -1)
    assert x2d.shape[1] == INPUT_SIZE

    TB = _choose_tb(B, tb)
    grid = (pl.cdiv(B, TB),)   # ragged last tile is masked by Pallas; no jnp.pad copy

    out = pl.pallas_call(
        mnistnet_kernel,
        out_shape=jax.ShapeDtypeStruct((B, N_PAD), out_dtype),
        grid=grid,
        in_specs=[
            pl.BlockSpec((TB, INPUT_SIZE), lambda i: (i, 0)),     # x: tiled over the batch
            pl.BlockSpec((INPUT_SIZE, H_PAD), lambda i: (0, 0)),  # weights/biases stay resident
            pl.BlockSpec((1, H_PAD), lambda i: (0, 0)),
            pl.BlockSpec((H_PAD, N_PAD), lambda i: (0, 0)),
            pl.BlockSpec((1, N_PAD), lambda i: (0, 0)),
        ],
        out_specs=pl.BlockSpec((TB, N_PAD), lambda i: (i, 0)),
        compiler_params=pltpu.CompilerParams(
            dimension_semantics=("parallel",),
            vmem_limit_bytes=_VMEM_LIMIT,
        ),
    )(x2d, w1p, b1p, w2p, b2p)

    if slice_output:
        # Module semantics: (B, 10). Call this under jit so the narrowing fuses downstream,
        # or pass slice_output=False and consume the zero-padded (B, 128) block directly.
        return out[:, :N_CLASSES]
    return out


def init_params(key):
    # Deterministic synthetic init (uniform ~ torch default Linear init scale).
    k1, k2, k3, k4 = jax.random.split(key, 4)
    bound1 = 1.0 / (INPUT_SIZE ** 0.5)
    bound2 = 1.0 / (HIDDEN_DIM ** 0.5)
    w1 = jax.random.uniform(k1, (INPUT_SIZE, HIDDEN_DIM), jnp.float32, -bound1, bound1)
    b1 = jax.random.uniform(k2, (HIDDEN_DIM,), jnp.float32, -bound1, bound1)
    w2 = jax.random.uniform(k3, (HIDDEN_DIM, N_CLASSES), jnp.float32, -bound2, bound2)
    b2 = jax.random.uniform(k4, (N_CLASSES,), jnp.float32, -bound2, bound2)
    return w1, b1, w2, b2


def reference_forward_bf16(x, w1, b1, w2, b2):
    # Mirrors the kernel's arithmetic (bf16 matmul operands, f32 accumulation/elementwise).
    B = x.shape[0]
    x2d = x.reshape(B, -1).astype(jnp.bfloat16)
    h = jnp.dot(x2d, w1.astype(jnp.bfloat16), preferred_element_type=jnp.float32) + b1
    h = 1.0 / (1.0 + jnp.exp(-h))
    logits = (
        jnp.dot(h.astype(jnp.bfloat16), w2.astype(jnp.bfloat16),
                preferred_element_type=jnp.float32)
        + b2
    )
    return jax.nn.log_softmax(logits, axis=1)


def reference_forward_f32(x, w1, b1, w2, b2):
    # Pure f32 reference matching the PyTorch module semantics.
    B = x.shape[0]
    x2d = x.reshape(B, -1).astype(jnp.float32)
    h = jax.nn.sigmoid(x2d @ w1 + b1)
    logits = h @ w2 + b2
    return jax.nn.log_softmax(logits, axis=1)


if __name__ == "__main__":
    key = jax.random.PRNGKey(0)
    kx, kx2, kp = jax.random.split(key, 3)

    w1, b1, w2, b2 = init_params(kp)
    padded = prepare_params(w1, b1, w2, b2)   # built once, reused across calls

    # jit the whole forward so the reshape / final [:, :10] narrowing fuse around the kernel.
    fwd = jax.jit(functools.partial(mnistnet_forward, tb=1024))

    # Even split: B=64 -> TB=32, two grid steps (exercises the parallel batch grid).
    B = 64
    x = jax.random.normal(kx, (B, 1, 28, 28), dtype=jnp.float32)   # NCHW, like MNIST inputs
    out = jax.block_until_ready(fwd(x, *padded))
    assert out.shape == (B, N_CLASSES)

    # Tolerances: bf16 operands + approx (EUP) reciprocal in the sigmoid.
    ref_bf16 = reference_forward_bf16(x, w1, b1, w2, b2)
    assert jnp.allclose(out, ref_bf16, atol=1e-2, rtol=1e-2), "mismatch vs bf16-matched reference"
    ref_f32 = reference_forward_f32(x, w1, b1, w2, b2)
    assert jnp.allclose(out, ref_f32, atol=5e-2, rtol=5e-2), "mismatch vs f32 module semantics"

    # Ragged batch: B=50 with TB=32 -> last tile masked by Pallas (no jnp.pad copy).
    B2 = 50
    x2 = jax.random.normal(kx2, (B2, 1, 28, 28), dtype=jnp.float32)
    out2 = jax.block_until_ready(fwd(x2, *padded))
    assert out2.shape == (B2, N_CLASSES)
    assert jnp.allclose(out2, reference_forward_bf16(x2, w1, b1, w2, b2), atol=1e-2, rtol=1e-2), \
        "mismatch on ragged batch"

    print("KERNEL_OK")
</pallas_src>

<mosaic_0001>
module attributes {stable_mosaic.version = 11 : i64} {
  func.func @mnistnet_kernel(%arg0: i32, %arg1: memref<32x784xf32, #tpu.memory_space<vmem>>, %arg2: memref<784x128xbf16, #tpu.memory_space<vmem>>, %arg3: memref<1x128xf32, #tpu.memory_space<vmem>>, %arg4: memref<128x128xbf16, #tpu.memory_space<vmem>>, %arg5: memref<1x128xf32, #tpu.memory_space<vmem>>, %arg6: memref<32x128xf32, #tpu.memory_space<vmem>>) attributes {dimension_semantics = [#tpu.dimension_semantics<parallel>], iteration_bounds = array<i64: 2>, scalar_prefetch = 0 : i64, scratch_operands = 0 : i64, tpu.core_type = #tpu.core_type<tc>, window_params = [{transform_indices = @transform_0, window_bounds = array<i64: 32, 784>}, {pipeline_mode = #tpu.pipeline_mode<synchronous>, transform_indices = @transform_1, window_bounds = array<i64: 784, 128>}, {pipeline_mode = #tpu.pipeline_mode<synchronous>, transform_indices = @transform_2, window_bounds = array<i64: 1, 128>}, {pipeline_mode = #tpu.pipeline_mode<synchronous>, transform_indices = @transform_3, window_bounds = array<i64: 128, 128>}, {pipeline_mode = #tpu.pipeline_mode<synchronous>, transform_indices = @transform_4, window_bounds = array<i64: 1, 128>}, {transform_indices = @transform_5, window_bounds = array<i64: 32, 128>}]} {
    %c0 = arith.constant 0 : index
    %c0_0 = arith.constant 0 : index
    %0 = vector.load %arg1[%c0, %c0_0] : memref<32x784xf32, #tpu.memory_space<vmem>>, vector<32x784xf32>
    %1 = arith.truncf %0 : vector<32x784xf32> to vector<32x784xbf16>
    %c0_1 = arith.constant 0 : index
    %c0_2 = arith.constant 0 : index
    %2 = vector.load %arg2[%c0_1, %c0_2] : memref<784x128xbf16, #tpu.memory_space<vmem>>, vector<784x128xbf16>
    %cst = arith.constant dense<0.000000e+00> : vector<32x128xf32>
    %3 = tpu.matmul %1, %2, %cst {dimension_numbers = #tpu.dot_dimension_numbers<[1], [0], [0], [1], [0, 0, 1, 1], [], []>} : vector<32x784xbf16>, vector<784x128xbf16>, vector<32x128xf32> -> vector<32x128xf32>
    %c0_3 = arith.constant 0 : index
    %c0_4 = arith.constant 0 : index
    %4 = vector.load %arg3[%c0_3, %c0_4] : memref<1x128xf32, #tpu.memory_space<vmem>>, vector<1x128xf32>
    %5 = vector.broadcast %4 : vector<1x128xf32> to vector<32x128xf32>
    %6 = arith.addf %3, %5 : vector<32x128xf32>
    %cst_5 = arith.constant 0.000000e+00 : f32
    %7 = vector.broadcast %cst_5 : f32 to vector<32x128xf32>
    %8 = arith.subf %7, %6 : vector<32x128xf32>
    %9 = math.exp %8 : vector<32x128xf32>
    %cst_6 = arith.constant 1.000000e+00 : f32
    %10 = vector.broadcast %cst_6 : f32 to vector<32x128xf32>
    %11 = arith.addf %10, %9 : vector<32x128xf32>
    %12 = tpu.reciprocal %11 {approx = true} : vector<32x128xf32> -> vector<32x128xf32>
    %13 = arith.truncf %12 : vector<32x128xf32> to vector<32x128xbf16>
    %c0_7 = arith.constant 0 : index
    %c0_8 = arith.constant 0 : index
    %14 = vector.load %arg4[%c0_7, %c0_8] : memref<128x128xbf16, #tpu.memory_space<vmem>>, vector<128x128xbf16>
    %cst_9 = arith.constant dense<0.000000e+00> : vector<32x128xf32>
    %15 = tpu.matmul %13, %14, %cst_9 {dimension_numbers = #tpu.dot_dimension_numbers<[1], [0], [0], [1], [0, 0, 1, 1], [], []>} : vector<32x128xbf16>, vector<128x128xbf16>, vector<32x128xf32> -> vector<32x128xf32>
    %c0_10 = arith.constant 0 : index
    %c0_11 = arith.constant 0 : index
    %16 = vector.load %arg5[%c0_10, %c0_11] : memref<1x128xf32, #tpu.memory_space<vmem>>, vector<1x128xf32>
    %17 = vector.broadcast %16 : vector<1x128xf32> to vector<32x128xf32>
    %18 = arith.addf %15, %17 : vector<32x128xf32>
    %19 = tpu.iota {dimensions = array<i32: 1>} : vector<32x128xi32>
    %c10_i32 = arith.constant 10 : i32
    %20 = vector.broadcast %c10_i32 : i32 to vector<32x128xi32>
    %21 = arith.cmpi slt, %19, %20 : vector<32x128xi32>
    %cst_12 = arith.constant -1.000000e+30 : f32
    %22 = vector.broadcast %cst_12 : f32 to vector<32x128xf32>
    %23 = arith.select %21, %18, %22 : vector<32x128xi1>, vector<32x128xf32>
    %cst_13 = arith.constant dense<0xFF800000> : vector<32xf32>
    %24 = vector.multi_reduction <maximumf>, %23, %cst_13 [1] : vector<32x128xf32> to vector<32xf32>
    %25 = vector.shape_cast %24 : vector<32xf32> to vector<32x1xf32>
    %26 = vector.broadcast %25 : vector<32x1xf32> to vector<32x128xf32>
    %27 = arith.subf %18, %26 : vector<32x128xf32>
    %28 = math.exp %27 : vector<32x128xf32>
    %cst_14 = arith.constant 0.000000e+00 : f32
    %29 = vector.broadcast %cst_14 : f32 to vector<32x128xf32>
    %30 = arith.select %21, %28, %29 : vector<32x128xi1>, vector<32x128xf32>
    %cst_15 = arith.constant dense<0.000000e+00> : vector<32xf32>
    %31 = vector.multi_reduction <add>, %30, %cst_15 [1] : vector<32x128xf32> to vector<32xf32>
    %32 = vector.shape_cast %31 : vector<32xf32> to vector<32x1xf32>
    %33 = math.log %32 : vector<32x1xf32>
    %34 = vector.broadcast %25 : vector<32x1xf32> to vector<32x128xf32>
    %35 = arith.subf %18, %34 : vector<32x128xf32>
    %36 = vector.broadcast %33 : vector<32x1xf32> to vector<32x128xf32>
    %37 = arith.subf %35, %36 : vector<32x128xf32>
    %cst_16 = arith.constant 0.000000e+00 : f32
    %38 = vector.broadcast %cst_16 : f32 to vector<32x128xf32>
    %39 = arith.select %21, %37, %38 : vector<32x128xi1>, vector<32x128xf32>
    %c0_17 = arith.constant 0 : index
    %c0_18 = arith.constant 0 : index
    %40 = vector.load %arg6[%c0_17, %c0_18] : memref<32x128xf32, #tpu.memory_space<vmem>>, vector<32x128xf32>
    tpu.vector_store %arg6[%c0_17, %c0_18], %39 {strides = array<i32>} : memref<32x128xf32, #tpu.memory_space<vmem>>, vector<32x128xf32>,
    return
  }
  func.func @transform_0(%arg0: i32) -> (i32, i32) {
    %c0_i32 = arith.constant 0 : i32
    %c0_i32_0 = arith.constant 0 : i32
    return %arg0, %c0_i32 : i32, i32
  }
  func.func @transform_1(%arg0: i32) -> (i32, i32) {
    %c0_i32 = arith.constant 0 : i32
    %c0_i32_0 = arith.constant 0 : i32
    %c0_i32_1 = arith.constant 0 : i32
    return %c0_i32, %c0_i32_0 : i32, i32
  }
  func.func @transform_2(%arg0: i32) -> (i32, i32) {
    %c0_i32 = arith.constant 0 : i32
    %c0_i32_0 = arith.constant 0 : i32
    %c0_i32_1 = arith.constant 0 : i32
    return %c0_i32, %c0_i32_0 : i32, i32
  }
  func.func @transform_3(%arg0: i32) -> (i32, i32) {
    %c0_i32 = arith.constant 0 : i32
    %c0_i32_0 = arith.constant 0 : i32
    %c0_i32_1 = arith.constant 0 : i32
    return %c0_i32, %c0_i32_0 : i32, i32
  }
  func.func @transform_4(%arg0: i32) -> (i32, i32) {
    %c0_i32 = arith.constant 0 : i32
    %c0_i32_0 = arith.constant 0 : i32
    %c0_i32_1 = arith.constant 0 : i32
    return %c0_i32, %c0_i32_0 : i32, i32
  }
  func.func @transform_5(%arg0: i32) -> (i32, i32) {
    %c0_i32 = arith.constant 0 : i32
    %c0_i32_0 = arith.constant 0 : i32
    return %arg0, %c0_i32 : i32, i32
  }
}

</mosaic_0001>

<bundles_post_ra>
// kernel: mnistnet_forward.1
= control target key start
LH: loop header
LB: loop body
LE: loop exit
PB: predicated region body
PF: predicated region fallthrough
CT: control target
= control target key end

     0   :  { %s1464_s18 = smov 0   ;;  %s1721_s0 = inlined_call_operand.vmem [shape: f32[64,784], index: 0, kind: input, shape index: {}]   ;;  %s1722_s1 = inlined_call_operand.vmem [shape: bf16[784,128], index: 1, kind: input, shape index: {}]   ;;  %s1723_s2 = inlined_call_operand.vmem [shape: f32[1,128], index: 2, kind: input, shape index: {}]   ;;  %s1724_s3 = inlined_call_operand.vmem [shape: bf16[128,128], index: 3, kind: input, shape index: {}]   ;;  %s1725_s4 = inlined_call_operand.vmem [shape: f32[1,128], index: 4, kind: input, shape index: {}]   ;;  %s1726_s5 = inlined_call_operand.vmem [shape: f32[64,128], index: 5, kind: output, shape index: {}]  }
   0x1 LB: > { %s1133_s19 = sadd.s32 4294967295, %s1432_s18   ;;  %p1137_p0 = scmp.ge.s32.totalorder %s1432_s18, 1  ;;  %s1432_s18 = sphi %s1464_s18, %s15_s18  }
   0x2   : > { %p189_p1 = scmp.lt.s32.totalorder %s1432_s18, 3 }
   0x4   : > { %p190_p2 = pnand %p1137_p0, %p189_p1 }
   0x5   : > { %v1337_v0 = vld [vmem:[%s1722_s1 + $0x40] sm:$0xff] (!%p190_p2)   ;;  %v1341_v4 = vld [vmem:[%s1722_s1 + $0x48] sm:$0xff] (!%p190_p2)   ;;  %v1345_v8 = vld [vmem:[%s1722_s1 + $0x50] sm:$0xff] (!%p190_p2)   ;;  %s1138_s25 = sshll.u32 (!%p190_p2), %s1133_s19, 2  ;;  %vm673_vm0 = vcmask (!%p190_p2), 130048  }
   0x6   : > { %193 = sbr.rel (%p190_p2) target bundleno = 870 (0x366), region = 40  ;;  %v1338_v1 = vld [vmem:[%s1722_s1] sm:$0xff] (!%p190_p2)   ;;  %1205 = vmatprep.subr.bf16.mxu0 (!%p190_p2), %v1337_v0  ;;  %v1342_v5 = vld [vmem:[%s1722_s1 + $0x8] sm:$0xff] (!%p190_p2)   ;;  %v1346_v9 = vld [vmem:[%s1722_s1 + $0x10] sm:$0xff] (!%p190_p2)   ;;  %p219_p3 = scmp.lt.s32.totalorder (!%p190_p2), %s1138_s25, 7 }
   0x7   : > { %v1339_v2 = vld [vmem:[%s1722_s1 + $0xc0] sm:$0xff] (!%p190_p2)   ;;  %1206 = vmatpush3.bf16.msra.mxu0 (!%p190_p2), %v1338_v1  ;;  %v1343_v6 = vld [vmem:[%s1722_s1 + $0xc8] sm:$0xff] (!%p190_p2)   ;;  %v1347_v10 = vld [vmem:[%s1722_s1 + $0xd0] sm:$0xff] (!%p190_p2)  }
   0x8   : > { %v1340_v3 = vld [vmem:[%s1722_s1 + $0x80] sm:$0xff] (!%p190_p2)   ;;  %1233 = vmatprep.subr.bf16.mxu1 (!%p190_p2), %v1339_v2  ;;  %1207 = vmatprep.subr.bf16.mxu0 (!%p190_p2), %v1341_v4  ;;  %v1344_v7 = vld [vmem:[%s1722_s1 + $0x88] sm:$0xff] (!%p190_p2)   ;;  %v1348_v11 = vld [vmem:[%s1722_s1 + $0x90] sm:$0xff] (!%p190_p2)  }
   0x9   : > { %1234 = vmatpush3.bf16.msra.mxu1 (!%p190_p2), %v1340_v3  ;;  %v1349_v12 = vld [vmem:[%s1722_s1 + $0x58] sm:$0xff] (!%p190_p2)   ;;  %v1353_v16 = vld [vmem:[%s1722_s1 + $0x60] sm:$0xff] (!%p190_p2)   ;;  %v1357_v20 = vld [vmem:[%s1722_s1 + $0x68] sm:$0xff] (!%p190_p2)  }
   0xa   : > { %1235 = vmatprep.subr.bf16.mxu1 (!%p190_p2), %v1343_v6  ;;  %v1350_v13 = vld [vmem:[%s1722_s1 + $0x18] sm:$0xff] (!%p190_p2)   ;;  %v1354_v17 = vld [vmem:[%s1722_s1 + $0x20] sm:$0xff] (!%p190_p2)   ;;  %v1358_v21 = vld [vmem:[%s1722_s1 + $0x28] sm:$0xff] (!%p190_p2)  }
   0xb   : > { %1208 = vmatpush3.bf16.msra.mxu0 (!%p190_p2), %v1342_v5  ;;  %v1351_v14 = vld [vmem:[%s1722_s1 + $0xd8] sm:$0xff] (!%p190_p2)   ;;  %v1355_v18 = vld [vmem:[%s1722_s1 + $0xe0] sm:$0xff] (!%p190_p2)   ;;  %v1359_v22 = vld [vmem:[%s1722_s1 + $0xe8] sm:$0xff] (!%p190_p2)  }
   0xc   : > { %1209 = vmatprep.subr.bf16.mxu0 (!%p190_p2), %v1345_v8  ;;  %v1352_v15 = vld [vmem:[%s1722_s1 + $0x98] sm:$0xff] (!%p190_p2)   ;;  %v1356_v19 = vld [vmem:[%s1722_s1 + $0xa0] sm:$0xff] (!%p190_p2)   ;;  %v1360_v23 = vld [vmem:[%s1722_s1 + $0xa8] sm:$0xff] (!%p190_p2)  }
   0xd   : > { %1236 = vmatpush3.bf16.msra.mxu1 %v1344_v7  ;;  %s1728_s25 = smov (!%p219_p3, %s1138_s25), 7  ;;  %v1361_v24 = vld [vmem:[%s1722_s1 + $0x70] sm:$0xff]   ;;  %v1365_v28 = vld [vmem:[%s1722_s1 + $0x78] sm:$0xff]   ;;  %v1369_v38 = vld [vmem:[%s1722_s1 + $0x140] sm:$0xff]  }
   0xe   : > { %1237 = vmatprep.subr.bf16.mxu1 %v1347_v10  ;;  %s1328_s24 = smul.u32 56, %s1728_s25  ;;  %v1362_v25 = vld [vmem:[%s1722_s1 + $0x30] sm:$0xff]   ;;  %v1366_v29 = vld [vmem:[%s1722_s1 + $0x38] sm:$0xff]   ;;  %v1370_v42 = vld [vmem:[%s1722_s1 + $0x100] sm:$0xff]   ;;  %s1141_s29 = sshll.u32 %s1728_s25, 3 }
   0xf   : > { %1210 = vmatpush3.bf16.msra.mxu0 %v1346_v9  ;;  %v1363_v26 = vld [vmem:[%s1722_s1 + $0xf0] sm:$0xff]   ;;  %v1367_v30 = vld [vmem:[%s1722_s1 + $0xf8] sm:$0xff]   ;;  %v1371_v46 = vld [vmem:[%s1722_s1 + $0x148] sm:$0xff]   ;;  %s229_s7 = scalar_lea.vmem %s1726_s5, %s1141_s29 }
  0x10   : > { %1211 = vmatprep.subr.bf16.mxu0 %v1349_v12  ;;  %v1364_v27 = vld [vmem:[%s1722_s1 + $0xb0] sm:$0xff]   ;;  %s1567_s10 = scalar_lea.vmem %s1721_s0, %s1328_s24  ;;  %v1368_v34 = vld [vmem:[%s1722_s1 + $0xb8] sm:$0xff]   ;;  %v1372_v47 = vld [vmem:[%s1722_s1 + $0x108] sm:$0xff]  }
  0x11   : > { %1238 = vmatpush3.bf16.msra.mxu1 %v1348_v11  ;;  %v233_v31 = vld [vmem:[%s1567_s10 + $0x8] sm:$0xff]  ;;  %v240_v32 = vld [vmem:[%s1567_s10 + $0x40] sm:$0xff]  ;;  %v239_v36 = vld [vmem:[%s1567_s10 + $0x38] sm:$0xff] }
  0x12   : > { %1239 = vmatprep.subr.bf16.mxu1 %v1351_v14  ;;  %v261_v33 = vpack.c.bf16 %v240_v32, %v233_v31  ;;  %v232_v35 = vld [vmem:[%s1567_s10] sm:$0xff]  ;;  %v235_v39 = vld [vmem:[%s1567_s10 + $0x18] sm:$0xff]  ;;  %v242_v40 = vld [vmem:[%s1567_s10 + $0x50] sm:$0xff] }
  0x13   : > { %1212 = vmatpush3.bf16.msra.mxu0 %v1350_v13  ;;  %v260_v37 = vpack.c.bf16 %v239_v36, %v232_v35  ;;  %v263_v41 = vpack.c.bf16 %v242_v40, %v235_v39  ;;  %v234_v43 = vld [vmem:[%s1567_s10 + $0x10] sm:$0xff]  ;;  %v241_v44 = vld [vmem:[%s1567_s10 + $0x48] sm:$0xff]  ;;  %v1375_v50 = vld [vmem:[%s1722_s1 + $0x158] sm:$0xff]  }
  0x14   : > { %1213 = vmatprep.subr.bf16.mxu0 %v1353_v16  ;;  %712 = vmatprep.mubr.bf16.mxu0 %v261_v33  ;;  %v262_v45 = vpack.c.bf16 %v241_v44, %v234_v43  ;;  %v1373_v48 = vld [vmem:[%s1722_s1 + $0x150] sm:$0xff]   ;;  %v1376_v51 = vld [vmem:[%s1722_s1 + $0x118] sm:$0xff]   ;;  %v1377_v54 = vld [vmem:[%s1722_s1 + $0x160] sm:$0xff]  }
  0x15   : > { %1240 = vmatpush3.bf16.msra.mxu1 %v1352_v15  ;;  %761 = vmatprep.mubr.bf16.mxu1 %v263_v41  ;;  %v1374_v49 = vld [vmem:[%s1722_s1 + $0x110] sm:$0xff]   ;;  %v247_v52 = vld [vmem:[%s1567_s10 + $0x78] sm:$0xff]  ;;  %v253_v57 = vld [vmem:[%s1567_s10 + $0xa8] sm:$0xff] }
  0x16   : > { %1241 = vmatprep.subr.bf16.mxu1 %v1355_v18  ;;  %v254_v53 = vld [vmem:[%s1567_s10 + $0xb0] sm:$0xff]  ;;  %v1378_v58 = vld [vmem:[%s1722_s1 + $0x120] sm:$0xff]   ;;  %v249_v60 = vld [vmem:[%s1567_s10 + $0x88] sm:$0xff] }
  0x17   : > { %1214 = vmatpush3.bf16.msra.mxu0 %v1354_v17  ;;  %v268_v55 = vpack.c.bf16 %v254_v53, %v247_v52  ;;  %v246_v56 = vld [vmem:[%s1567_s10 + $0x70] sm:$0xff]  ;;  %v256_v61 = vld [vmem:[%s1567_s10 + $0xc0] sm:$0xff]  ;;  %v255_v0 = vld [vmem:[%s1567_s10 + $0xb8] sm:$0xff] }
  0x18   : > { %1215 = vmatprep.subr.bf16.mxu0 %v1357_v20  ;;  %v267_v59 = vpack.c.bf16 %v253_v57, %v246_v56  ;;  %v248_v62 = vld [vmem:[%s1567_s10 + $0x80] sm:$0xff]  ;;  %v270_v63 = vpack.c.bf16 %v256_v61, %v249_v60  ;;  %v1379_v1 = vld [vmem:[%s1722_s1 + $0x168] sm:$0xff]   ;;  %v1381_v5 = vld [vmem:[%s1722_s1 + $0x170] sm:$0xff]  }
  0x19   : > { %1242 = vmatpush3.bf16.msra.mxu1 %v1356_v19  ;;  %v269_v2 = vpack.c.bf16 %v255_v0, %v248_v62  ;;  %v1383_v3 = vld [vmem:[%s1722_s1 + $0x180] sm:$0xff]   ;;  %v1380_v4 = vld [vmem:[%s1722_s1 + $0x128] sm:$0xff]   ;;  %v238_v9 = vld [vmem:[%s1567_s10 + $0x30] sm:$0xff] }
  0x1a   : > { %1243 = vmatprep.subr.bf16.mxu1 %v1359_v22  ;;  %v237_v6 = vld [vmem:[%s1567_s10 + $0x28] sm:$0xff]  ;;  %v244_v7 = vld [vmem:[%s1567_s10 + $0x60] sm:$0xff]  ;;  %v259_v12 = vld [vmem:[%s1567_s10 + $0xd8] sm:$0xff] }
  0x1b   : > { %1216 = vmatpush3.bf16.msra.mxu0 %v1358_v21  ;;  %v265_v8 = vpack.c.bf16 %v244_v7, %v237_v6  ;;  %v245_v10 = vld [vmem:[%s1567_s10 + $0x68] sm:$0xff]  ;;  %v252_v11 = vld [vmem:[%s1567_s10 + $0xa0] sm:$0xff]  ;;  %v1382_v13 = vld [vmem:[%s1722_s1 + $0x130] sm:$0xff]  }
  0x1c   : > { %1217 = vmatprep.subr.bf16.mxu0 %v1361_v24  ;;  %v266_v14 = vpack.c.bf16 %v245_v10, %v238_v9  ;;  %v273_v15 = vpack.c.bf16 %v259_v12, %v252_v11  ;;  %v1384_v16 = vld [vmem:[%s1722_s1 + $0x178] sm:$0xff]   ;;  %v236_v18 = vld [vmem:[%s1567_s10 + $0x20] sm:$0xff]  ;;  %v258_v21 = vld [vmem:[%s1567_s10 + $0xd0] sm:$0xff] }
  0x1d   : > { %1244 = vmatpush3.bf16.msra.mxu1 %v1360_v23  ;;  %v1385_v17 = vld [vmem:[%s1722_s1 + $0x138] sm:$0xff]   ;;  %v250_v24 = vld [vmem:[%s1567_s10 + $0x90] sm:$0xff]  ;;  %v1390_v31 = vld [vmem:[%s1724_s3 + $0x20] sm:$0xff]  }
  0x1e   : > { %1245 = vmatprep.subr.bf16.mxu1 %v1363_v26  ;;  %v243_v19 = vld [vmem:[%s1567_s10 + $0x58] sm:$0xff]  ;;  %v1391_v32 = vld [vmem:[%s1724_s3 + $0x28] sm:$0xff]   ;;  %v1392_v33 = vld [vmem:[%s1724_s3 + $0x30] sm:$0xff]  }
  0x1f   : > { %1218 = vmatpush3.bf16.msra.mxu0 %v1362_v25  ;;  %v251_v20 = vld [vmem:[%s1567_s10 + $0x98] sm:$0xff]  ;;  %v264_v22 = vpack.c.bf16 %v243_v19, %v236_v18  ;;  %v257_v25 = vld [vmem:[%s1567_s10 + $0xc8] sm:$0xff]  ;;  %v1142_v36 = vld [vmem:[%s1723_s2] ss:$0 sm:$0xff] }
  0x20   : > { %1219 = vmatprep.subr.bf16.mxu0 %v1365_v28  ;;  %v272_v23 = vpack.c.bf16 %v258_v21, %v251_v20  ;;  %v271_v26 = vpack.c.bf16 %v257_v25, %v250_v24  ;;  %v1387_v28 = vld [vmem:[%s1724_s3 + $0x8] sm:$0xff]  }
  0x21   : > { %1246 = vmatpush3.bf16.msra.mxu1 %v1364_v27  ;;  %v1386_v27 = vld [vmem:[%s1724_s3] sm:$0xff]  }
  0x22   : > { %1247 = vmatprep.subr.bf16.mxu1 %v1367_v30  ;;  %v1389_v30 = vld [vmem:[%s1724_s3 + $0x18] sm:$0xff]  }
  0x23   : > { %1220 = vmatpush3.bf16.msra.mxu0 %v1366_v29  ;;  %v1388_v29 = vld [vmem:[%s1724_s3 + $0x10] sm:$0xff]  }
  0x24   : > { %1261 = vmatprep.subr.bf16.mxu0 %v1369_v38 }
  0x25   : > { %1248 = vmatpush3.bf16.msra.mxu1 %v1368_v34  ;;  %v1393_v34 = vld [vmem:[%s1724_s3 + $0x38] sm:$0xff]  }
  0x26   : > { %713 = vmatmul.mubr.bf16.vlgmr.msra.gmra.mrb[0].mxu0 %v260_v37  ;;  %1302 = vmatprep.subr.bf16.mxu1 %v1383_v3 }
  0x27   : > { %1262 = vmatpush3.bf16.msra.mxu0 %v1370_v42  ;;  %720 = vmatprep.mubr.bf16.mxu0 %v268_v55 }
  0x28   : > { %762 = vmatmul.mubr.bf16.vlgmr.msra.gmra.mrb[0].mxu1 %v262_v45  ;;  %1263 = vmatprep.subr.bf16.mxu0 %v1371_v46 }
  0x29   : > { %769 = vmatprep.mubr.bf16.mxu1 %v270_v63  ;;  %1303 = vmatpush3.bf16.msra.mxu1 %v1383_v3 }
  0x2a   : > { %1308 = vmatprep.subr.bf16.mxu1 %v1386_v27 }
  0x2b   : > { %1264 = vmatpush3.bf16.msra.mxu0 %v1372_v47 }
  0x2c   : > { %1265 = vmatprep.subr.bf16.mxu0 %v1373_v48 }
  0x2e   : > { %721 = vmatmul.mubr.bf16.gmra.mrb[4].mxu0 %v267_v59 }
  0x2f   : > { %1266 = vmatpush3.bf16.msra.mxu0 %v1374_v49  ;;  %810 = vmatprep.mubr.bf16.mxu0 %v265_v8 }
  0x30   : > { %1267 = vmatprep.subr.bf16.mxu0 %v1375_v50  ;;  %770 = vmatmul.mubr.bf16.gmra.mrb[4].mxu1 %v269_v2 }
  0x31   : > { %1304 = vmatprep.mubr.msk.bf16.mxu1 %vm673_vm0, %v266_v14 }
  0x33   : > { %1268 = vmatpush3.bf16.msra.mxu0 %v1376_v51 }
  0x34   : > { %1269 = vmatprep.subr.bf16.mxu0 %v1377_v54 }
  0x37   : > { %1270 = vmatpush3.bf16.msra.mxu0 %v1378_v58 }
  0x38   : > { %1271 = vmatprep.subr.bf16.mxu0 %v1379_v1  ;;  %1305 = vmatmul.mubr.msk.bf16.vlgmr.msra.gmra.mrb[8].mxu1 %vm673_vm0, %v273_v15 }
  0x39   : > { %1309 = vmatpush3.bf16.msra.mxu1 %v1386_v27 }
  0x3a   : > { %1310 = vmatprep.subr.bf16.mxu1 %v1387_v28 }
  0x3b   : > { %1272 = vmatpush3.bf16.msra.mxu0 %v1380_v4 }
  0x3c   : > { %1273 = vmatprep.subr.bf16.mxu0 %v1381_v5 }
  0x3d   : > { %1311 = vmatpush3.bf16.msra.mxu1 %v1387_v28 }
  0x3e   : > { %1312 = vmatprep.subr.bf16.mxu1 %v1388_v29 }
  0x3f   : > { %1274 = vmatpush3.bf16.msra.mxu0 %v1382_v13 }
  0x40   : > { %1275 = vmatprep.subr.bf16.mxu0 %v1384_v16 }
  0x41   : > { %1313 = vmatpush3.bf16.msra.mxu1 %v1388_v29 }
  0x42   : > { %1314 = vmatprep.subr.bf16.mxu1 %v1389_v30 }
  0x43   : > { %1276 = vmatpush3.bf16.msra.mxu0 %v1385_v17 }
  0x45   : > { %1315 = vmatpush3.bf16.msra.mxu1 %v1389_v30 }
  0x46   : > { %811 = vmatmul.mubr.bf16.vlgmr.msra.gmra.mrb[8].mxu0 %v264_v22  ;;  %1316 = vmatprep.subr.bf16.mxu1 %v1390_v31 }
  0x47   : > { %818 = vmatprep.mubr.bf16.mxu0 %v272_v23 }
  0x49   : > { %1317 = vmatpush3.bf16.msra.mxu1 %v1390_v31 }
  0x4a   : > { %1318 = vmatprep.subr.bf16.mxu1 %v1391_v32 }
  0x4d   : > { %1319 = vmatpush3.bf16.msra.mxu1 %v1391_v32 }
  0x4e   : > { %819 = vmatmul.mubr.bf16.gmra.mrb[12].mxu0 %v271_v26  ;;  %1320 = vmatprep.subr.bf16.mxu1 %v1392_v33 }
  0x51   : > { %1321 = vmatpush3.bf16.msra.mxu1 %v1392_v33 }
  0x52   : > { %1322 = vmatprep.subr.bf16.mxu1 %v1393_v34 }
  0x55   : > { %1323 = vmatpush3.bf16.msra.mxu1 %v1393_v34 }
  0xf9   : > { %v1221_v35 = vpop.f32.mrb[0].mxu0 }
  0xfa   : > { %v1222_v37 = vpop.f32.mrb[1].mxu0 }
  0xfb   : > { %v1223_v38 = vadd.f32 %v1222_v37, %v1221_v35  ;;  %v1224_v39 = vpop.f32.mrb[2].mxu0  ;;  %v1249_v40 = vpop.f32.mrb[0].mxu1 }
  0xfc   : > { %v1225_v41 = vpop.f32.mrb[3].mxu0  ;;  %v1250_v44 = vpop.f32.mrb[1].mxu1 }
  0xfd   : > { %v715_v42 = vadd.f32 %v1223_v38, %v1142_v36  ;;  %v1226_v43 = vadd.f32 %v1225_v41, %v1224_v39  ;;  %v1251_v45 = vadd.f32 %v1250_v44, %v1249_v40  ;;  %v1252_v46 = vpop.f32.mrb[2].mxu1 }
  0xfe   : > { %v1253_v48 = vpop.f32.mrb[3].mxu1 }
  0xff   : > { %v718_v47 = vadd.f32 %v1226_v43, %v1142_v36  ;;  %v764_v49 = vadd.f32 %v1251_v45, %v715_v42  ;;  %v1254_v50 = vadd.f32 %v1253_v48, %v1252_v46 }
 0x101   : > { %v767_v51 = vadd.f32 %v1254_v50, %v718_v47  ;;  %v1227_v52 = vpop.f32.mrb[4].mxu0  ;;  %v1018_v50 = vlaneseq }
 0x102   : > { %v1228_v53 = vpop.f32.mrb[5].mxu0 }
 0x103   : > { %v1229_v54 = vadd.f32 %v1228_v53, %v1227_v52  ;;  %v1230_v55 = vpop.f32.mrb[6].mxu0  ;;  %v1255_v56 = vpop.f32.mrb[4].mxu1  ;;  %v1194_v52 = vld [vmem:[%s1725_s4] ss:$0 sm:$0xff] }
 0x104   : > { %v1231_v57 = vpop.f32.mrb[7].mxu0  ;;  %v1256_v58 = vpop.f32.mrb[5].mxu1 }
 0x105   : > { %v723_v59 = vadd.f32 %v1229_v54, %v1142_v36  ;;  %v1232_v60 = vadd.f32 %v1231_v57, %v1230_v55  ;;  %v1257_v61 = vadd.f32 %v1256_v58, %v1255_v56  ;;  %v1258_v62 = vpop.f32.mrb[6].mxu1 }
 0x106   : > { %v1259_v63 = vpop.f32.mrb[7].mxu1 }
 0x107   : > { %v726_v0 = vadd.f32 %v1232_v60, %v1142_v36  ;;  %v772_v1 = vadd.f32 %v1257_v61, %v723_v59  ;;  %v1260_v2 = vadd.f32 %v1259_v63, %v1258_v62 }
 0x109   : > { %v775_v3 = vadd.f32 %v1260_v2, %v726_v0 }
 0x10b   : > { %v1306_v4 = vpop.f32.mrb[8].mxu1 }
 0x10c   : > { %v861_v5 = vpop.f32.mrb[9].mxu1 }
 0x10d   : > { %v1307_v6 = vpop.f32.mrb[10].mxu1 }
 0x10e   : > { %v864_v7 = vpop.f32.mrb[11].mxu1 }
 0x119   : > { %v1277_v8 = vpop.f32.mrb[8].mxu0 }
 0x11a   : > { %v1278_v9 = vpop.f32.mrb[9].mxu0 }
 0x11b   : > { %v1279_v10 = vadd.f32 %v1278_v9, %v1277_v8  ;;  %v1280_v11 = vpop.f32.mrb[10].mxu0 }
 0x11c   : > { %v1281_v12 = vpop.f32.mrb[11].mxu0 }
 0x11d   : > { %v1282_v13 = vadd.f32 %v1281_v12, %v1280_v11  ;;  %v813_v14 = vadd.f32 %v1279_v10, %v764_v49 }
 0x11f   : > { %v862_v15 = vadd.f32 %v861_v5, %v813_v14  ;;  %v816_v16 = vadd.f32 %v1282_v13, %v767_v51  ;;  %v1684_v51 = vand.u32 127, %v1018_v50 }
 0x121   : > { %v876_v17 = vsub.f32 0.0, %v862_v15  ;;  %v865_v18 = vadd.f32 %v864_v7, %v816_v16  ;;  %v1283_v19 = vpop.f32.mrb[12].mxu0  ;;  %vm1020_vm1 = vcmp.lt.s32.totalorder %v1684_v51, 10 }
 0x122   : > { %v1284_v20 = vpop.f32.mrb[13].mxu0 }
 0x123   : > { %v880_v21 = vmul.f32 1.442695, %v876_v17  ;;  %v877_v22 = vsub.f32 0.0, %v865_v18  ;;  %v1285_v23 = vadd.f32 %v1284_v20, %v1283_v19  ;;  %v1286_v24 = vpop.f32.mrb[14].mxu0 }
 0x124   : > { %v1287_v25 = vpop.f32.mrb[15].mxu0 }
 0x125   : > { %1394 = vpow2.f32 %v880_v21  ;;  %v882_v26 = vmul.f32 1.442695, %v877_v22  ;;  %v821_v27 = vadd.f32 %v1285_v23, %v772_v1  ;;  %v1288_v28 = vadd.f32 %v1287_v25, %v1286_v24 }
 0x127   : > { %1396 = vpow2.f32 %v882_v26  ;;  %v870_v29 = vadd.f32 %v1306_v4, %v821_v27  ;;  %v824_v30 = vadd.f32 %v1288_v28, %v775_v3 }
 0x129   : > { %v878_v31 = vsub.f32 0.0, %v870_v29  ;;  %v873_v32 = vadd.f32 %v1307_v6, %v824_v30 }
 0x12b   : > { %v884_v33 = vmul.f32 1.442695, %v878_v31  ;;  %v879_v34 = vsub.f32 0.0, %v873_v32 }
 0x12d   : > { %1398 = vpow2.f32 %v884_v33  ;;  %v886_v35 = vmul.f32 1.442695, %v879_v34 }
 0x12f   : > { %v1395_v36 = vpop.eup %1394  ;;  %1400 = vpow2.f32 %v886_v35 }
 0x130   : > { %v888_v37 = vadd.f32 1.0, %v1395_v36 }
 0x131   : > { %v1397_v38 = vpop.eup %1396 }
 0x132   : > { %v889_v39 = vadd.f32 1.0, %v1397_v38  ;;  %1402 = vrcp.f32 %v888_v37 }
 0x134   : > { %1404 = vrcp.f32 %v889_v39 }
 0x137   : > { %v1399_v40 = vpop.eup %1398 }
 0x138   : > { %v890_v41 = vadd.f32 1.0, %v1399_v40 }
 0x139   : > { %v1401_v42 = vpop.eup %1400 }
 0x13a   : > { %v891_v43 = vadd.f32 1.0, %v1401_v42  ;;  %1406 = vrcp.f32 %v890_v41 }
 0x13c   : > { %1408 = vrcp.f32 %v891_v43  ;;  %v1403_v44 = vpop.eup %1402 }
 0x13e   : > { %v1405_v45 = vpop.eup %1404 }
 0x13f   : > { %v896_v46 = vpack.c.bf16 %v1405_v45, %v1403_v44 }
 0x141   : > { %1324 = vmatprep.mubr.bf16.mxu1 %v896_v46 }
 0x144   : > { %v1407_v47 = vpop.eup %1406 }
 0x146   : > { %v1409_v48 = vpop.eup %1408 }
 0x147   : > { %v897_v49 = vpack.c.bf16 %v1409_v48, %v1407_v47 }
 0x149   : > { %1325 = vmatmul.mubr.bf16.vlgmr.msra.gmra.mrb[12].mxu1 %v897_v49 }
 0x21c   : > { %v1326_v53 = vpop.f32.mrb[12].mxu1 }
 0x21d   : > { %v1012_v54 = vadd.f32 %v1326_v53, %v1194_v52  ;;  %v1003_v55 = vpop.f32.mrb[13].mxu1 }
 0x21e   : > { %v1004_v56 = vadd.f32 %v1194_v52, %v1003_v55  ;;  %v1327_v57 = vpop.f32.mrb[14].mxu1 }
 0x21f   : > { %v1015_v58 = vadd.f32 %v1327_v57, %v1194_v52  ;;  %v1006_v59 = vpop.f32.mrb[15].mxu1  ;;  %v1023_v60 = vsel %vm1020_vm1, %v1012_v54, -1e+30 }
 0x220   : > { %v1007_v61 = vadd.f32 %v1194_v52, %v1006_v59  ;;  %1029 = vmax.xlane.f32.xlu1 %v1023_v60  ;;  %v1021_v62 = vsel %vm1020_vm1, %v1004_v56, -1e+30 }
 0x221   : > { %1025 = vmax.xlane.f32.xlu0 %v1021_v62  ;;  %v1024_v63 = vsel %vm1020_vm1, %v1015_v58, -1e+30 }
 0x222   : > { %v1022_v0 = vsel %vm1020_vm1, %v1007_v61, -1e+30 }
 0x224   : > { %1031 = vmax.xlane.f32.xlu1 %v1024_v63 }
 0x225   : > { %1027 = vmax.xlane.f32.xlu0 %v1022_v0 }
 0x2ad   : > { %v1030_v1 = vpop.xlane.xlu1 %1029 }
 0x2ae   : > { %v1035_v2 = vsub.f32 %v1012_v54, %v1030_v1  ;;  %v1026_v3 = vpop.xlane.xlu0 %1025 }
 0x2af   : > { %v1033_v4 = vsub.f32 %v1004_v56, %v1026_v3 }
 0x2b0   : > { %v1041_v5 = vmul.f32 1.442695, %v1035_v2 }
 0x2b1   : > { %v1037_v6 = vmul.f32 1.442695, %v1033_v4  ;;  %v1032_v7 = vpop.xlane.xlu1 %1031 }
 0x2b2   : > { %v1036_v8 = vsub.f32 %v1015_v58, %v1032_v7  ;;  %v1028_v9 = vpop.xlane.xlu0 %1027 }
 0x2b3   : > { %1410 = vpow2.f32 %v1037_v6  ;;  %v1034_v10 = vsub.f32 %v1007_v61, %v1028_v9 }
 0x2b4   : > { %1412 = vpow2.f32 %v1041_v5  ;;  %v1043_v11 = vmul.f32 1.442695, %v1036_v8 }
 0x2b5   : > { %v1039_v12 = vmul.f32 1.442695, %v1034_v10 }
 0x2b7   : > { %1414 = vpow2.f32 %v1039_v12 }
 0x2b8   : > { %1416 = vpow2.f32 %v1043_v11 }
 0x2bd   : > { %v1411_v13 = vpop.eup %1410 }
 0x2be   : > { %v1045_v14 = vsel %vm1020_vm1, %v1411_v13, 0.0  ;;  %v1413_v15 = vpop.eup %1412 }
 0x2bf   : > { %1049 = vadd.xlane.f32.xlu0 %v1045_v14  ;;  %v1047_v17 = vsel %vm1020_vm1, %v1413_v15, 0.0 }
 0x2c1   : > { %v1415_v16 = vpop.eup %1414 }
 0x2c2   : > { %v1046_v18 = vsel %vm1020_vm1, %v1415_v16, 0.0  ;;  %v1417_v19 = vpop.eup %1416 }
 0x2c3   : > { %1053 = vadd.xlane.f32.xlu0 %v1047_v17  ;;  %1051 = vadd.xlane.f32.xlu1 %v1046_v18  ;;  %v1048_v20 = vsel %vm1020_vm1, %v1417_v19, 0.0 }
 0x2c7   : > { %1055 = vadd.xlane.f32.xlu1 %v1048_v20 }
 0x34c   : > { %v1050_v21 = vpop.xlane.xlu0 %1049 }
 0x34d   : > { %1418 = vlog2.f32 %v1050_v21 }
 0x350   : > { %v1052_v22 = vpop.xlane.xlu1 %1051  ;;  %v1054_v23 = vpop.xlane.xlu0 %1053 }
 0x351   : > { %1420 = vlog2.f32 %v1052_v22 }
 0x352   : > { %1422 = vlog2.f32 %v1054_v23 }
 0x354   : > { %v1056_v24 = vpop.xlane.xlu1 %1055 }
 0x355   : > { %1424 = vlog2.f32 %v1056_v24 }
 0x357   : > { %v1419_v25 = vpop.eup %1418 }
 0x358   : > { %v1058_v26 = vmul.f32 0.6931472, %v1419_v25 }
 0x35a   : > { %v1065_v27 = vsub.f32 %v1033_v4, %v1058_v26 }
 0x35b   : > { %v1421_v28 = vpop.eup %1420 }
 0x35c   : > { %v1423_v29 = vpop.eup %1422  ;;  %v1069_v30 = vsel %vm1020_vm1, %v1065_v27, 0.0  ;;  %v1060_v31 = vmul.f32 0.6931472, %v1421_v28 }
 0x35d   : > { %1073 = vst [vmem:[%s229_s7] sm:$0xff] %v1069_v30  ;;  %v1062_v32 = vmul.f32 0.6931472, %v1423_v29 }
 0x35e   : > { %v1066_v33 = vsub.f32 %v1034_v10, %v1060_v31 }
 0x35f   : > { %v1425_v34 = vpop.eup %1424  ;;  %v1067_v35 = vsub.f32 %v1035_v2, %v1062_v32 }
 0x360   : > { %v1070_v36 = vsel %vm1020_vm1, %v1066_v33, 0.0  ;;  %v1064_v37 = vmul.f32 0.6931472, %v1425_v34 }
 0x361   : > { %1074 = vst [vmem:[%s229_s7 + $0x8] sm:$0xff] %v1070_v36  ;;  %v1071_v38 = vsel %vm1020_vm1, %v1067_v35, 0.0 }
 0x362   : > { %1075 = vst [vmem:[%s229_s7 + $0x10] sm:$0xff] %v1071_v38  ;;  %v1068_v39 = vsub.f32 %v1036_v8, %v1064_v37 }
 0x364   : > { %v1072_v40 = vsel %vm1020_vm1, %v1068_v39, 0.0 }
 0x365   : > { %1076 = vst [vmem:[%s229_s7 + $0x18] sm:$0xff] %v1072_v40 }
 0x366 PF: > { %s15_s18 = sadd.s32 1, %s1432_s18  }
 0x367   : > { %p12_p4 = scmp.ge.s32.totalorder %s15_s18, 4  }
 0x369   :  { %14 = sbr.rel (!%p12_p4) target bundleno = 1 (0x1), region = 70 }

</bundles_post_ra>
